<compile_context>
chip_gen: v5e
topology: v5e:2x2
jax: 0.10.0
libtpu: 0.0.40
codegen_flags: <defaults>
</compile_context>

<pallas_src>
import jax
import jax.numpy as jnp
from jax.experimental import pallas as pl
from jax.experimental.pallas import tpu as pltpu

# Small stand-ins for the real module dims (X_dim=1000, z_dim=100, h_dim=1500,
# eeg_dim=1000); deliberately NOT multiples of (8, 128) so the padding path is
# exercised exactly as it would be at the real sizes.
X_DIM = 100
Z_DIM = 20
H_DIM = 150
EEG_DIM = 100
LEAKY_SLOPE = 0.01          # nn.LeakyReLU() default


def _round_up(n, m):
    return (n + m - 1) // m * m


def _pad_to(a, shape):
    """Zero-pad a 2-D array up to `shape`."""
    return jnp.pad(a, [(0, t - s) for s, t in zip(a.shape, shape)])


# ---------------------------------------------------------------------------
# Capability probe: does this jax/Mosaic accept pipeline_mode=pl.Buffered(1)?
# Probed once, eagerly, on a trivial kernel — so a rejection surfaces here and
# never masks a lowering bug in the real kernel (and never fires inside jit).
# ---------------------------------------------------------------------------
_BUFFERED1_OK = None


def _supports_single_buffering():
    global _BUFFERED1_OK
    if _BUFFERED1_OK is None:
        try:
            spec = pl.BlockSpec((8, 128), lambda i: (0, 0),
                                pipeline_mode=pl.Buffered(1))

            def _probe(x_ref, o_ref):
                o_ref[...] = x_ref[...] + 1.0

            out = pl.pallas_call(
                _probe,
                out_shape=jax.ShapeDtypeStruct((8, 128), jnp.float32),
                grid=(1,),
                in_specs=[spec],
                out_specs=pl.BlockSpec((8, 128), lambda i: (0, 0)),
            )(jnp.zeros((8, 128), jnp.float32))
            jax.block_until_ready(out)
            _BUFFERED1_OK = True
        except Exception:
            _BUFFERED1_OK = False
    return _BUFFERED1_OK


# ---------------------------------------------------------------------------
# Kernel: one batch tile of the fused 2-layer MLP.
#   h = LeakyReLU(x @ W1 + b1);  o = h @ W2 + b2
# x is the pre-concatenated [z, feature] tile (bf16), accumulation in f32.
# ---------------------------------------------------------------------------
def _netg2_kernel(x_ref, w1_ref, b1_ref, w2_ref, b2_ref, o_ref):
    h = jnp.dot(x_ref[...], w1_ref[...], preferred_element_type=jnp.float32)
    h = h + b1_ref[...]                                    # (bm, Hp) f32
    h = jnp.maximum(h, LEAKY_SLOPE * h)                    # LeakyReLU: one vmax
    o = jnp.dot(h.astype(w2_ref.dtype), w2_ref[...],       # bf16 MXU, f32 acc
                preferred_element_type=jnp.float32)
    o_ref[...] = (o + b2_ref[...]).astype(o_ref.dtype)     # lane-dense store


def netg2_forward(z, feature, params, *, block_m=256, out_dtype=jnp.float32):
    """Pallas forward for _netG2.

    z: (B, z_dim), feature: (B, X_dim); params = (w1, b1, w2, b2) with
    w1: (z_dim + X_dim, h_dim), b1: (h_dim,), w2: (h_dim, eeg_dim),
    b2: (eeg_dim,)  (nn.Linear weights already transposed to (in, out)).
    Returns (B, eeg_dim) in `out_dtype` (float32 by default).
    """
    w1, b1, w2, b2 = params
    B, z_dim = z.shape
    _, x_dim = feature.shape
    d_in, h_dim = w1.shape
    d_out = w2.shape[1]
    assert d_in == z_dim + x_dim

    # --- batch tile: large MXU-friendly tiles, floored at 16 (bf16 packing),
    # capped at the (16-rounded) batch so tiny batches don't waste MXU passes.
    bm = _round_up(max(16, min(block_m, _round_up(B, 16))), 16)
    b_pad = _round_up(B, bm)

    # --- pad feature dims once, outside the kernel --------------------------
    kp_dim = _round_up(d_in, 128)      # layer-1 K: 128-aligned (bf16/MXU)
    hp_dim = _round_up(h_dim, 128)     # hidden (layer-2 K), lane-aligned
    dp_out = _round_up(d_out, 128)     # => unmasked lane-dense output stores

    cdt = jnp.bfloat16                 # MXU compute dtype (f32 accumulation)
    # torch.cat([z, feature], 1): done once here on the padded bf16 copies.
    x_p = _pad_to(jnp.concatenate([z, feature], axis=1).astype(cdt),
                  (b_pad, kp_dim))
    w1p = _pad_to(w1.astype(cdt), (kp_dim, hp_dim))
    w2p = _pad_to(w2.astype(cdt), (hp_dim, dp_out))
    b1p = _pad_to(b1.reshape(1, -1).astype(jnp.float32), (1, hp_dim))
    b2p = _pad_to(b2.reshape(1, -1).astype(jnp.float32), (1, dp_out))

    n_tiles = b_pad // bm
    grid = (n_tiles,)

    # Megacore split only pays off with enough tiles per core (each core
    # re-fetches the full resident weight set).
    dim_sem = ("parallel",) if n_tiles >= 8 else ("arbitrary",)

    out_itemsize = jnp.dtype(out_dtype).itemsize
    cost = pl.CostEstimate(
        flops=2 * b_pad * (kp_dim * hp_dim + hp_dim * dp_out),
        transcendentals=0,
        bytes_accessed=int(
            2 * (x_p.size + w1p.size + w2p.size)
            + 4 * (b1p.size + b2p.size)
            + out_itemsize * b_pad * dp_out),
    )

    single_buffer = _supports_single_buffering()

    def resident(shape):
        # Grid-invariant operands (weights/biases): block index never changes,
        # so single-buffering them halves resident VMEM at zero perf cost.
        if single_buffer:
            return pl.BlockSpec(shape, lambda i: (0, 0),
                                pipeline_mode=pl.Buffered(1))
        return pl.BlockSpec(shape, lambda i: (0, 0))

    out = pl.pallas_call(
        _netg2_kernel,
        out_shape=jax.ShapeDtypeStruct((b_pad, dp_out), out_dtype),
        grid_spec=pltpu.PrefetchScalarGridSpec(
            num_scalar_prefetch=0,
            grid=grid,
            in_specs=[
                pl.BlockSpec((bm, kp_dim), lambda i: (i, 0)),   # [z|feature]
                resident((kp_dim, hp_dim)),                     # W1
                resident((1, hp_dim)),                          # b1
                resident((hp_dim, dp_out)),                     # W2
                resident((1, dp_out)),                          # b2
            ],
            out_specs=pl.BlockSpec((bm, dp_out), lambda i: (i, 0)),
        ),
        compiler_params=pltpu.CompilerParams(
            dimension_semantics=dim_sem,
            # ~16-20 MiB actually needed at the real model dims; leave plenty
            # of headroom under v7x's 64 MiB physical per-TC VMEM.
            vmem_limit_bytes=32 * 1024 * 1024,
        ),
        cost_estimate=cost,
    )(x_p, w1p, b1p, w2p, b2p)

    return out[:B, :d_out]


def init_params(key, x_dim=X_DIM, z_dim=Z_DIM, h_dim=H_DIM, eeg_dim=EEG_DIM):
    """Synthetic params shaped like nn.Linear weights, stored as (in, out)."""
    k1, k2, k3, k4 = jax.random.split(key, 4)
    d_in = x_dim + z_dim
    s1 = 1.0 / jnp.sqrt(d_in)
    s2 = 1.0 / jnp.sqrt(h_dim)
    w1 = jax.random.uniform(k1, (d_in, h_dim), jnp.float32, -1.0, 1.0) * s1
    b1 = jax.random.uniform(k2, (h_dim,), jnp.float32, -1.0, 1.0) * s1
    w2 = jax.random.uniform(k3, (h_dim, eeg_dim), jnp.float32, -1.0, 1.0) * s2
    b2 = jax.random.uniform(k4, (eeg_dim,), jnp.float32, -1.0, 1.0) * s2
    return w1, b1, w2, b2


def _reference(z, feature, params):
    """Pure-JAX reference using the same bf16-input / f32-accumulate matmuls."""
    w1, b1, w2, b2 = params
    bf = jnp.bfloat16
    x = jnp.concatenate([z, feature], axis=1).astype(bf)
    h = jnp.dot(x, w1.astype(bf), preferred_element_type=jnp.float32) + b1
    h = jnp.maximum(h, LEAKY_SLOPE * h)
    return jnp.dot(h.astype(bf), w2.astype(bf),
                   preferred_element_type=jnp.float32) + b2


if __name__ == "__main__":
    key = jax.random.PRNGKey(0)
    kz, kf, kp = jax.random.split(key, 3)

    B = 200        # deliberately ragged: exercises batch padding
    z = jax.random.normal(kz, (B, Z_DIM), jnp.float32)
    feature = jax.random.normal(kf, (B, X_DIM), jnp.float32)
    params = init_params(kp)

    out = netg2_forward(z, feature, params, block_m=256)
    out = jax.block_until_ready(out)

    ref = _reference(z, feature, params)
    assert out.shape == (B, EEG_DIM), out.shape
    assert jnp.allclose(out, ref, atol=1e-2, rtol=1e-2), (
        "mismatch vs reference, max abs err = %f"
        % float(jnp.max(jnp.abs(out - ref))))

    print("KERNEL_OK")
</pallas_src>

<mosaic_0001>
module attributes {stable_mosaic.version = 11 : i64} {
  func.func @_probe(%arg0: i32, %arg1: memref<8x128xf32, #tpu.memory_space<vmem>>, %arg2: memref<8x128xf32, #tpu.memory_space<vmem>>) attributes {dimension_semantics = [#tpu.dimension_semantics<arbitrary>], iteration_bounds = array<i64: 1>, scalar_prefetch = 0 : i64, scratch_operands = 0 : i64, tpu.core_type = #tpu.core_type<tc>, window_params = [{pipeline_mode = #tpu.pipeline_mode<synchronous>, transform_indices = @transform_0, window_bounds = array<i64: 8, 128>}, {pipeline_mode = #tpu.pipeline_mode<synchronous>, transform_indices = @transform_1, window_bounds = array<i64: 8, 128>}]} {
    %c0 = arith.constant 0 : index
    %c0_0 = arith.constant 0 : index
    %0 = vector.load %arg1[%c0, %c0_0] : memref<8x128xf32, #tpu.memory_space<vmem>>, vector<8x128xf32>
    %cst = arith.constant 1.000000e+00 : f32
    %1 = vector.broadcast %cst : f32 to vector<8x128xf32>
    %2 = arith.addf %0, %1 : vector<8x128xf32>
    %c0_1 = arith.constant 0 : index
    %c0_2 = arith.constant 0 : index
    %3 = vector.load %arg2[%c0_1, %c0_2] : memref<8x128xf32, #tpu.memory_space<vmem>>, vector<8x128xf32>
    tpu.vector_store %arg2[%c0_1, %c0_2], %2 {strides = array<i32>} : memref<8x128xf32, #tpu.memory_space<vmem>>, vector<8x128xf32>,
    return
  }
  func.func @transform_0(%arg0: i32) -> (i32, i32) {
    %c0_i32 = arith.constant 0 : i32
    %c0_i32_0 = arith.constant 0 : i32
    %c0_i32_1 = arith.constant 0 : i32
    return %c0_i32, %c0_i32_0 : i32, i32
  }
  func.func @transform_1(%arg0: i32) -> (i32, i32) {
    %c0_i32 = arith.constant 0 : i32
    %c0_i32_0 = arith.constant 0 : i32
    %c0_i32_1 = arith.constant 0 : i32
    return %c0_i32, %c0_i32_0 : i32, i32
  }
}

module attributes {stable_mosaic.version = 11 : i64} {
  func.func @_netg2_kernel(%arg0: i32, %arg1: memref<208x128xbf16, #tpu.memory_space<vmem>>, %arg2: memref<128x256xbf16, #tpu.memory_space<vmem>>, %arg3: memref<1x256xf32, #tpu.memory_space<vmem>>, %arg4: memref<256x128xbf16, #tpu.memory_space<vmem>>, %arg5: memref<1x128xf32, #tpu.memory_space<vmem>>, %arg6: memref<208x128xf32, #tpu.memory_space<vmem>>) attributes {dimension_semantics = [#tpu.dimension_semantics<arbitrary>], iteration_bounds = array<i64: 1>, scalar_prefetch = 0 : i64, scratch_operands = 0 : i64, tpu.core_type = #tpu.core_type<tc>, window_params = [{transform_indices = @transform_0, window_bounds = array<i64: 208, 128>}, {pipeline_mode = #tpu.pipeline_mode<synchronous>, transform_indices = @transform_1, window_bounds = array<i64: 128, 256>}, {pipeline_mode = #tpu.pipeline_mode<synchronous>, transform_indices = @transform_2, window_bounds = array<i64: 1, 256>}, {pipeline_mode = #tpu.pipeline_mode<synchronous>, transform_indices = @transform_3, window_bounds = array<i64: 256, 128>}, {pipeline_mode = #tpu.pipeline_mode<synchronous>, transform_indices = @transform_4, window_bounds = array<i64: 1, 128>}, {transform_indices = @transform_5, window_bounds = array<i64: 208, 128>}]} {
    %c0 = arith.constant 0 : index
    %c0_0 = arith.constant 0 : index
    %0 = vector.load %arg1[%c0, %c0_0] : memref<208x128xbf16, #tpu.memory_space<vmem>>, vector<208x128xbf16>
    %c0_1 = arith.constant 0 : index
    %c0_2 = arith.constant 0 : index
    %1 = vector.load %arg2[%c0_1, %c0_2] : memref<128x256xbf16, #tpu.memory_space<vmem>>, vector<128x256xbf16>
    %cst = arith.constant dense<0.000000e+00> : vector<208x256xf32>
    %2 = tpu.matmul %0, %1, %cst {dimension_numbers = #tpu.dot_dimension_numbers<[1], [0], [0], [1], [0, 0, 1, 1], [], []>} : vector<208x128xbf16>, vector<128x256xbf16>, vector<208x256xf32> -> vector<208x256xf32>
    %c0_3 = arith.constant 0 : index
    %c0_4 = arith.constant 0 : index
    %3 = vector.load %arg3[%c0_3, %c0_4] : memref<1x256xf32, #tpu.memory_space<vmem>>, vector<1x256xf32>
    %4 = vector.broadcast %3 : vector<1x256xf32> to vector<208x256xf32>
    %5 = arith.addf %2, %4 : vector<208x256xf32>
    %cst_5 = arith.constant 0.00999999977 : f32
    %6 = vector.broadcast %cst_5 : f32 to vector<208x256xf32>
    %7 = arith.mulf %6, %5 : vector<208x256xf32>
    %8 = arith.maximumf %5, %7 : vector<208x256xf32>
    %9 = arith.truncf %8 : vector<208x256xf32> to vector<208x256xbf16>
    %c0_6 = arith.constant 0 : index
    %c0_7 = arith.constant 0 : index
    %10 = vector.load %arg4[%c0_6, %c0_7] : memref<256x128xbf16, #tpu.memory_space<vmem>>, vector<256x128xbf16>
    %cst_8 = arith.constant dense<0.000000e+00> : vector<208x128xf32>
    %11 = tpu.matmul %9, %10, %cst_8 {dimension_numbers = #tpu.dot_dimension_numbers<[1], [0], [0], [1], [0, 0, 1, 1], [], []>} : vector<208x256xbf16>, vector<256x128xbf16>, vector<208x128xf32> -> vector<208x128xf32>
    %c0_9 = arith.constant 0 : index
    %c0_10 = arith.constant 0 : index
    %12 = vector.load %arg5[%c0_9, %c0_10] : memref<1x128xf32, #tpu.memory_space<vmem>>, vector<1x128xf32>
    %13 = vector.broadcast %12 : vector<1x128xf32> to vector<208x128xf32>
    %14 = arith.addf %11, %13 : vector<208x128xf32>
    %c0_11 = arith.constant 0 : index
    %c0_12 = arith.constant 0 : index
    %15 = vector.load %arg6[%c0_11, %c0_12] : memref<208x128xf32, #tpu.memory_space<vmem>>, vector<208x128xf32>
    tpu.vector_store %arg6[%c0_11, %c0_12], %14 {strides = array<i32>} : memref<208x128xf32, #tpu.memory_space<vmem>>, vector<208x128xf32>,
    return
  }
  func.func @transform_0(%arg0: i32) -> (i32, i32) {
    %c0_i32 = arith.constant 0 : i32
    %c0_i32_0 = arith.constant 0 : i32
    return %arg0, %c0_i32 : i32, i32
  }
  func.func @transform_1(%arg0: i32) -> (i32, i32) {
    %c0_i32 = arith.constant 0 : i32
    %c0_i32_0 = arith.constant 0 : i32
    %c0_i32_1 = arith.constant 0 : i32
    return %c0_i32, %c0_i32_0 : i32, i32
  }
  func.func @transform_2(%arg0: i32) -> (i32, i32) {
    %c0_i32 = arith.constant 0 : i32
    %c0_i32_0 = arith.constant 0 : i32
    %c0_i32_1 = arith.constant 0 : i32
    return %c0_i32, %c0_i32_0 : i32, i32
  }
  func.func @transform_3(%arg0: i32) -> (i32, i32) {
    %c0_i32 = arith.constant 0 : i32
    %c0_i32_0 = arith.constant 0 : i32
    %c0_i32_1 = arith.constant 0 : i32
    return %c0_i32, %c0_i32_0 : i32, i32
  }
  func.func @transform_4(%arg0: i32) -> (i32, i32) {
    %c0_i32 = arith.constant 0 : i32
    %c0_i32_0 = arith.constant 0 : i32
    %c0_i32_1 = arith.constant 0 : i32
    return %c0_i32, %c0_i32_0 : i32, i32
  }
  func.func @transform_5(%arg0: i32) -> (i32, i32) {
    %c0_i32 = arith.constant 0 : i32
    %c0_i32_0 = arith.constant 0 : i32
    return %arg0, %c0_i32 : i32, i32
  }
}

</mosaic_0001>

<bundles_post_ra>
// kernel: tpu_custom_call.1
= control target key start
LH: loop header
LB: loop body
LE: loop exit
PB: predicated region body
PF: predicated region fallthrough
CT: control target
= control target key end

     0   :  { %6 = vsyncpa [#allocation3], 0  ;;  %s115_s0 = inlined_call_operand.hbm [shape: f32[8,128], index: 0, kind: input, shape index: {}]   ;;  %s116_s1 = inlined_call_operand.hbm [shape: f32[8,128], index: 1, kind: output, shape index: {}]  }
   0x1   :  { %7 = vsyncpa [#allocation4], 0  ;;  %s13_s8 = sshll.u32 %s115_s0, 4  ;;  %s97_s9 = smov [#allocation2]   ;;  %s14_s8 = int_to_ptr.hbm [resolvable:$true] %s13_s8 }
   0x2   :  { %s15_s10 = sshll.u32 %s97_s9, 4  ;;  %s16_s10 = int_to_ptr.vmem [resolvable:$true] %s15_s10 }
   0x3   :  { %18 = dma.hbm_to_vmem [thread:$0]  %s14_s8, 128, %s16_s10, [#allocation3]  }
   0x4   :  { %93 = dma.done.wait [#allocation3], 128  }
   0x5   :  { %94 = vsyncadd [#allocation3], 4294967168  ;;  %s98_s11 = smov [#allocation5]   ;;  %s33_s15 = sshll.u32 %s116_s1, 4  ;;  %v23_v0 = vld [vmem:[#allocation2] sm:$0xff]  ;;  %s34_s15 = int_to_ptr.hbm [resolvable:$true] %s33_s15 }
   0x6   :  { %s31_s12 = sshll.u32 %s98_s11, 4  ;;  %v24_v1 = vadd.f32 1.0, %v23_v0  ;;  %s32_s12 = int_to_ptr.vmem [resolvable:$true] %s31_s12 }
   0x8   :  { %25 = vst [vmem:[#allocation5] sm:$0xff] %v24_v1 }
   0x9   :  { %36 = dma.vmem_to_hbm [thread:$0]  %s32_s12, 128, %s34_s15, [#allocation4]  }
   0xa   :  { %95 = dma.done.wait [#allocation4], 128  }
   0xb   :  { %96 = vsyncadd [#allocation4], 4294967168 }
   0xc   :  { %41 = vsyncpa [#allocation3], 1 }
   0xd   :  { %42 = vsyncpa [#allocation4], 1 }

// kernel: tpu_custom_call.1
= control target key start
LH: loop header
LB: loop body
LE: loop exit
PB: predicated region body
PF: predicated region fallthrough
CT: control target
= control target key end

     0   :  { %10 = vsyncpa [#allocation3], 0  ;;  %s1403_s0 = inlined_call_operand.hbm [shape: bf16[208,128], index: 0, kind: input, shape index: {}]   ;;  %s1404_s1 = inlined_call_operand.hbm [shape: bf16[128,256], index: 1, kind: input, shape index: {}]   ;;  %s1405_s2 = inlined_call_operand.hbm [shape: f32[1,256], index: 2, kind: input, shape index: {}]   ;;  %s1406_s3 = inlined_call_operand.hbm [shape: bf16[256,128], index: 3, kind: input, shape index: {}]   ;;  %s1407_s4 = inlined_call_operand.vmem [shape: f32[1,128], index: 4, kind: input, shape index: {}]   ;;  %s1408_s5 = inlined_call_operand.hbm [shape: f32[208,128], index: 5, kind: output, shape index: {}]  }
   0x1   :  { %11 = vsyncpa [#allocation6], 0 }
   0x2   :  { %12 = vsyncpa [#allocation9], 0  ;;  %s31_s20 = sshll.u32 %s1404_s1, 4  ;;  %s32_s20 = int_to_ptr.hbm [resolvable:$true] %s31_s20 }
   0x3   :  { %13 = vsyncpa [#allocation4], 0  ;;  %s1256_s21 = smov [#allocation5]   ;;  %s18_s25 = sshll.u32 %s1403_s0, 4  ;;  %s19_s25 = int_to_ptr.hbm [resolvable:$true] %s18_s25 }
   0x4   :  { %s33_s22 = sshll.u32 %s1256_s21, 4  ;;  %s1257_s26 = smov 128   ;;  %s34_s22 = int_to_ptr.vmem [resolvable:$true] %s33_s22 }
   0x5   :  { %s1258_s27 = smov 8   ;;  %s1259_s28 = smov [#allocation2]  }
   0x6   :  { %39 = dma.hbm_to_vmem [thread:$0]  %s32_s20, 2048, %s34_s22, [#allocation6], %s1257_s26, %s1257_s26, %s1258_s27  }
   0x7   :  { %s20_s29 = sshll.u32 %s1259_s28, 4  ;;  %s1260_s1 = smov 64   ;;  %s21_s29 = int_to_ptr.vmem [resolvable:$true] %s20_s29 }
   0x8   :  { %s1261_s30 = smov 4   ;;  %s45_s8 = sshll.u32 %s1405_s2, 4  ;;  %s46_s8 = int_to_ptr.hbm [resolvable:$true] %s45_s8 }
   0x9   :  { %26 = dma.hbm_to_vmem [thread:$0]  %s19_s25, 1664, %s21_s29, [#allocation3], %s1260_s1, %s1260_s1, %s1261_s30  }
   0xa   :  { %s1262_s9 = smov [#allocation7]   ;;  %s55_s12 = sshll.u32 %s1406_s3, 4  ;;  %s56_s12 = int_to_ptr.hbm [resolvable:$true] %s55_s12 }
   0xb   :  { %s47_s0 = sshll.u32 %s1262_s9, 4  ;;  %s1263_s13 = smov [#allocation8]   ;;  %s48_s0 = int_to_ptr.vmem [resolvable:$true] %s47_s0 }
   0xc   :  { %50 = dma.hbm_to_vmem [thread:$0]  %s46_s8, 32, %s48_s0, [#allocation6]  }
   0xd   :  { %s57_s14 = sshll.u32 %s1263_s13, 4  ;;  %s58_s14 = int_to_ptr.vmem [resolvable:$true] %s57_s14 }
   0xe   :  { %63 = dma.hbm_to_vmem [thread:$0]  %s56_s12, 2048, %s58_s14, [#allocation9], %s1260_s1, %s1260_s1, %s1261_s30  }
   0xf   :  { %1248 = dma.done.wait [#allocation3], 1664  }
  0x10   :  { %1249 = vsyncadd [#allocation3], 4294965632 }
  0x11   :  { %1250 = dma.done.wait [#allocation6], 2080  }
  0x12   :  { %1251 = vsyncadd [#allocation6], 4294965216 }
  0x13   :  { %1252 = dma.done.wait [#allocation9], 2048  }
  0x14   :  { %1253 = vsyncadd [#allocation9], 4294965248  ;;  %v1003_v0 = vld [vmem:[#allocation5 + $0x70] sm:$0xf]  ;;  %v1101_v1 = vld [vmem:[#allocation5 + $0x74] sm:$0xf0] }
  0x15   :  { %v1100_v2 = vld [vmem:[#allocation5 + $0x74] sm:$0xf]  ;;  %v1004_v3 = vor.u32 %v1101_v1, %v1003_v0  ;;  %v1005_v4 = vld [vmem:[#allocation5 + $0x78] sm:$0xf0]  ;;  %v995_v5 = vld [vmem:[#allocation5 + $0x60] sm:$0xf] }
  0x16   :  { %v1099_v6 = vld [vmem:[#allocation5 + $0x64] sm:$0xf0]  ;;  %v1008_v7 = vor.u32 %v1100_v2, %v1005_v4  ;;  %v1098_v8 = vld [vmem:[#allocation5 + $0x64] sm:$0xf]  ;;  %v997_v9 = vld [vmem:[#allocation5 + $0x68] sm:$0xf0] }
  0x17   :  { %288 = vmatpush.bf16.msra.mxu0 %v1004_v3  ;;  %v996_v10 = vor.u32 %v1099_v6, %v995_v5  ;;  %v1000_v11 = vor.u32 %v1098_v8, %v997_v9  ;;  %v987_v12 = vld [vmem:[#allocation5 + $0x50] sm:$0xf]  ;;  %v1097_v13 = vld [vmem:[#allocation5 + $0x54] sm:$0xf0]  ;;  %v1096_v14 = vld [vmem:[#allocation5 + $0x54] sm:$0xf] }
  0x18   :  { %362 = vmatpush.bf16.msra.mxu1 %v1008_v7  ;;  %v989_v15 = vld [vmem:[#allocation5 + $0x58] sm:$0xf0]  ;;  %v988_v16 = vor.u32 %v1097_v13, %v987_v12  ;;  %v979_v18 = vld [vmem:[#allocation5 + $0x40] sm:$0xf]  ;;  %v1095_v19 = vld [vmem:[#allocation5 + $0x44] sm:$0xf0] }
  0x19   :  { %v992_v17 = vor.u32 %v1096_v14, %v989_v15  ;;  %v1094_v20 = vld [vmem:[#allocation5 + $0x44] sm:$0xf]  ;;  %v981_v21 = vld [vmem:[#allocation5 + $0x48] sm:$0xf0]  ;;  %v980_v22 = vor.u32 %v1095_v19, %v979_v18  ;;  %v971_v24 = vld [vmem:[#allocation5 + $0x30] sm:$0xf] }
  0x1a   :  { %v984_v23 = vor.u32 %v1094_v20, %v981_v21  ;;  %v1093_v25 = vld [vmem:[#allocation5 + $0x34] sm:$0xf0]  ;;  %v1092_v26 = vld [vmem:[#allocation5 + $0x34] sm:$0xf]  ;;  %v973_v27 = vld [vmem:[#allocation5 + $0x38] sm:$0xf0] }
  0x1b   :  { %289 = vmatpush.bf16.msra.mxu0 %v996_v10  ;;  %v972_v28 = vor.u32 %v1093_v25, %v971_v24  ;;  %v976_v29 = vor.u32 %v1092_v26, %v973_v27  ;;  %v963_v30 = vld [vmem:[#allocation5 + $0x20] sm:$0xf]  ;;  %v1091_v31 = vld [vmem:[#allocation5 + $0x24] sm:$0xf0]  ;;  %v1090_v32 = vld [vmem:[#allocation5 + $0x24] sm:$0xf] }
  0x1c   :  { %363 = vmatpush.bf16.msra.mxu1 %v1000_v11  ;;  %v965_v33 = vld [vmem:[#allocation5 + $0x28] sm:$0xf0]  ;;  %v964_v34 = vor.u32 %v1091_v31, %v963_v30  ;;  %v955_v36 = vld [vmem:[#allocation5 + $0x10] sm:$0xf]  ;;  %v1089_v37 = vld [vmem:[#allocation5 + $0x14] sm:$0xf0] }
  0x1d   :  { %v968_v35 = vor.u32 %v1090_v32, %v965_v33  ;;  %v1088_v38 = vld [vmem:[#allocation5 + $0x14] sm:$0xf]  ;;  %v957_v39 = vld [vmem:[#allocation5 + $0x18] sm:$0xf0]  ;;  %v956_v40 = vor.u32 %v1089_v37, %v955_v36  ;;  %v947_v42 = vld [vmem:[#allocation5] sm:$0xf] }
  0x1e   :  { %v960_v41 = vor.u32 %v1088_v38, %v957_v39  ;;  %v1087_v43 = vld [vmem:[#allocation5 + $0x4] sm:$0xf0]  ;;  %v1086_v44 = vld [vmem:[#allocation5 + $0x4] sm:$0xf]  ;;  %v949_v45 = vld [vmem:[#allocation5 + $0x8] sm:$0xf0] }
  0x1f   :  { %290 = vmatpush.bf16.msra.mxu0 %v988_v16  ;;  %v948_v46 = vor.u32 %v1087_v43, %v947_v42  ;;  %v952_v47 = vor.u32 %v1086_v44, %v949_v45  ;;  %v1073_v48 = vld [vmem:[#allocation2] sm:$0xff]  ;;  %v1074_v49 = vld [vmem:[#allocation2 + $0x8] sm:$0xff]  ;;  %v1075_v50 = vld [vmem:[#allocation2 + $0x10] sm:$0xff]  ;;  %s878_s18 = sshll.u32 %s1408_s5, 4  ;;  %s879_s18 = int_to_ptr.hbm [resolvable:$true] %s878_s18 }
  0x20   :  { %364 = vmatpush.bf16.msra.mxu1 %v992_v17  ;;  %v1076_v51 = vld [vmem:[#allocation2 + $0x18] sm:$0xff]  ;;  %v1077_v52 = vld [vmem:[#allocation2 + $0x20] sm:$0xff]  ;;  %v1078_v55 = vld [vmem:[#allocation2 + $0x28] sm:$0xff] }
  0x21   :  { %v1109_v53 = vld [vmem:[#allocation8 + $0x38] sm:$0xff]  ;;  %v1108_v56 = vld [vmem:[#allocation8 + $0x30] sm:$0xff]  ;;  %v1107_v58 = vld [vmem:[#allocation8 + $0x28] sm:$0xff] }
  0x22   :  { %v1117_v54 = vld [vmem:[#allocation8 + $0x78] sm:$0xff]  ;;  %698 = vmatpush.bf16.msra.mxu2 %v1109_v53  ;;  %v1116_v57 = vld [vmem:[#allocation8 + $0x70] sm:$0xff]  ;;  %v1115_v59 = vld [vmem:[#allocation8 + $0x68] sm:$0xff] }
  0x23   :  { %291 = vmatpush.bf16.msra.mxu0 %v980_v22  ;;  %772 = vmatpush.bf16.msra.mxu3 %v1117_v54  ;;  %v1106_v60 = vld [vmem:[#allocation8 + $0x20] sm:$0xff]  ;;  %v1105_v63 = vld [vmem:[#allocation8 + $0x18] sm:$0xff]  ;;  %v1104_v1 = vld [vmem:[#allocation8 + $0x10] sm:$0xff] }
  0x24   :  { %365 = vmatpush.bf16.msra.mxu1 %v984_v23  ;;  %v1114_v61 = vld [vmem:[#allocation8 + $0x60] sm:$0xff]  ;;  %v1113_v0 = vld [vmem:[#allocation8 + $0x58] sm:$0xff]  ;;  %v1112_v2 = vld [vmem:[#allocation8 + $0x50] sm:$0xff] }
  0x25   :  { %v1079_v62 = vld [vmem:[#allocation2 + $0x30] sm:$0xff]  ;;  %v1080_v7 = vld [vmem:[#allocation2 + $0x38] sm:$0xff]  ;;  %v124_v8 = vld [vmem:[#allocation7] sm:$0x3] }
  0x26   :  { %699 = vmatpush.bf16.msra.mxu2 %v1108_v56  ;;  %v1103_v3 = vld [vmem:[#allocation8 + $0x8] sm:$0xff]  ;;  %v1102_v5 = vld [vmem:[#allocation8] sm:$0xff]  ;;  %v1081_v9 = vld [vmem:[#allocation2 + $0x40] sm:$0xff]  ;;  %v1310_v11 = vperm.slane %v124_v8, 0  ;;  %v1312_v13 = vperm.slane %v124_v8, 1 }
  0x27   :  { %292 = vmatpush.bf16.msra.mxu0 %v972_v28  ;;  %773 = vmatpush.bf16.msra.mxu3 %v1116_v57  ;;  %v1111_v4 = vld [vmem:[#allocation8 + $0x48] sm:$0xff]  ;;  %v1110_v6 = vld [vmem:[#allocation8 + $0x40] sm:$0xff] }
  0x28   :  { %366 = vmatpush.bf16.msra.mxu1 %v976_v29  ;;  %v1082_v29 = vld [vmem:[#allocation2 + $0x48] sm:$0xff] }
  0x2a   :  { %700 = vmatpush.bf16.msra.mxu2 %v1107_v58 }
  0x2b   :  { %293 = vmatpush.bf16.msra.mxu0 %v964_v34  ;;  %774 = vmatpush.bf16.msra.mxu3 %v1115_v59 }
  0x2c   :  { %367 = vmatpush.bf16.msra.mxu1 %v968_v35 }
  0x2e   :  { %701 = vmatpush.bf16.msra.mxu2 %v1106_v60 }
  0x2f   :  { %294 = vmatpush.bf16.msra.mxu0 %v956_v40  ;;  %775 = vmatpush.bf16.msra.mxu3 %v1114_v61 }
  0x30   :  { %368 = vmatpush.bf16.msra.mxu1 %v960_v41 }
  0x32   :  { %702 = vmatpush.bf16.msra.mxu2 %v1105_v63 }
  0x33   :  { %295 = vmatpush.bf16.msra.mxu0 %v948_v46  ;;  %776 = vmatpush.bf16.msra.mxu3 %v1113_v0 }
  0x34   :  { %369 = vmatpush.bf16.msra.mxu1 %v952_v47 }
  0x36   :  { %296 = vmatmul.bf16.vlgmr.msra.gmra.mxu0 %v1073_v48  ;;  %703 = vmatpush.bf16.msra.mxu2 %v1104_v1 }
  0x37   :  { %370 = vmatmul.bf16.vlgmr.msra.gmra.mxu1 %v1073_v48  ;;  %777 = vmatpush.bf16.msra.mxu3 %v1112_v2  ;;  %v1083_v48 = vld [vmem:[#allocation2 + $0x50] sm:$0xff] }
  0x3a   :  { %704 = vmatpush.bf16.msra.mxu2 %v1103_v3  ;;  %v1084_v3 = vld [vmem:[#allocation2 + $0x58] sm:$0xff] }
  0x3b   :  { %778 = vmatpush.bf16.msra.mxu3 %v1111_v4 }
  0x3e   :  { %705 = vmatpush.bf16.msra.mxu2 %v1102_v5 }
  0x3f   :  { %779 = vmatpush.bf16.msra.mxu3 %v1110_v6 }
  0x46   :  { %301 = vmatmul.bf16.gmra.mxu0 %v1074_v49 }
  0x47   :  { %375 = vmatmul.bf16.gmra.mxu1 %v1074_v49 }
  0x56   :  { %306 = vmatmul.bf16.gmra.mxu0 %v1075_v50 }
  0x57   :  { %380 = vmatmul.bf16.gmra.mxu1 %v1075_v50 }
  0x66   :  { %311 = vmatmul.bf16.gmra.mxu0 %v1076_v51 }
  0x67   :  { %385 = vmatmul.bf16.gmra.mxu1 %v1076_v51 }
  0x76   :  { %316 = vmatmul.bf16.gmra.mxu0 %v1077_v52 }
  0x77   :  { %390 = vmatmul.bf16.gmra.mxu1 %v1077_v52 }
  0x86   :  { %321 = vmatmul.bf16.gmra.mxu0 %v1078_v55 }
  0x87   :  { %395 = vmatmul.bf16.gmra.mxu1 %v1078_v55 }
  0x96   :  { %326 = vmatmul.bf16.gmra.mxu0 %v1079_v62 }
  0x97   :  { %400 = vmatmul.bf16.gmra.mxu1 %v1079_v62 }
  0xa6   :  { %331 = vmatmul.bf16.gmra.mxu0 %v1080_v7 }
  0xa7   :  { %405 = vmatmul.bf16.gmra.mxu1 %v1080_v7 }
  0xb3   :  { %v297_v10 = vpop.f32.mrf.mxu0 }
  0xb4   :  { %v371_v12 = vpop.f32.mrf.mxu1  ;;  %v298_v14 = vadd.f32 %v297_v10, %v1310_v11 }
  0xb5   :  { %v372_v15 = vadd.f32 %v371_v12, %v1312_v13 }
  0xb6   :  { %336 = vmatmul.bf16.gmra.mxu0 %v1081_v9  ;;  %v436_v17 = vmul.f32 0.01, %v298_v14 }
  0xb7   :  { %410 = vmatmul.bf16.gmra.mxu1 %v1081_v9  ;;  %v437_v20 = vmul.f32 0.01, %v372_v15 }
  0xb8   :  { %v488_v24 = vmax.f32 %v298_v14, %v436_v17 }
  0xb9   :  { %v489_v26 = vmax.f32 %v372_v15, %v437_v20 }
  0xbb   :  { %v299_v16 = vpop.f32.mrf.mxu0 }
  0xbc   :  { %v300_v18 = vadd.f32 %v299_v16, %v1310_v11  ;;  %v373_v19 = vpop.f32.mrf.mxu1 }
  0xbd   :  { %v374_v21 = vadd.f32 %v373_v19, %v1312_v13 }
  0xbe   :  { %v438_v22 = vmul.f32 0.01, %v300_v18 }
  0xbf   :  { %v439_v23 = vmul.f32 0.01, %v374_v21 }
  0xc0   :  { %v490_v25 = vmax.f32 %v300_v18, %v438_v22 }
  0xc1   :  { %v491_v27 = vmax.f32 %v374_v21, %v439_v23 }
  0xc2   :  { %v540_v28 = vpack.c.bf16 %v490_v25, %v488_v24  ;;  %v1085_v24 = vld [vmem:[#allocation2 + $0x60] sm:$0xff] }
  0xc3   :  { %v302_v30 = vpop.f32.mrf.mxu0  ;;  %v541_v31 = vpack.c.bf16 %v491_v27, %v489_v26 }
  0xc4   :  { %v376_v32 = vpop.f32.mrf.mxu1  ;;  %706 = vmatmul.bf16.vlgmr.msra.gmra.mxu2 %v540_v28  ;;  %v303_v33 = vadd.f32 %v302_v30, %v1310_v11 }
  0xc5   :  { %780 = vmatmul.bf16.vlgmr.msra.gmra.mxu3 %v541_v31  ;;  %v377_v34 = vadd.f32 %v376_v32, %v1312_v13 }
  0xc6   :  { %341 = vmatmul.bf16.gmra.mxu0 %v1082_v29  ;;  %v440_v36 = vmul.f32 0.01, %v303_v33 }
  0xc7   :  { %415 = vmatmul.bf16.gmra.mxu1 %v1082_v29  ;;  %v441_v39 = vmul.f32 0.01, %v377_v34 }
  0xc8   :  { %v492_v43 = vmax.f32 %v303_v33, %v440_v36 }
  0xc9   :  { %v493_v45 = vmax.f32 %v377_v34, %v441_v39 }
  0xcb   :  { %v304_v35 = vpop.f32.mrf.mxu0 }
  0xcc   :  { %v305_v37 = vadd.f32 %v304_v35, %v1310_v11  ;;  %v378_v38 = vpop.f32.mrf.mxu1 }
  0xcd   :  { %v379_v40 = vadd.f32 %v378_v38, %v1312_v13 }
  0xce   :  { %v442_v41 = vmul.f32 0.01, %v305_v37 }
  0xcf   :  { %v443_v42 = vmul.f32 0.01, %v379_v40 }
  0xd0   :  { %v494_v44 = vmax.f32 %v305_v37, %v442_v41 }
  0xd1   :  { %v495_v46 = vmax.f32 %v379_v40, %v443_v42 }
  0xd2   :  { %v542_v47 = vpack.c.bf16 %v494_v44, %v492_v43 }
  0xd3   :  { %v307_v49 = vpop.f32.mrf.mxu0  ;;  %v543_v50 = vpack.c.bf16 %v495_v46, %v493_v45 }
  0xd4   :  { %v381_v51 = vpop.f32.mrf.mxu1  ;;  %711 = vmatmul.bf16.gmra.mxu2 %v542_v47  ;;  %v308_v52 = vadd.f32 %v307_v49, %v1310_v11 }
  0xd5   :  { %785 = vmatmul.bf16.gmra.mxu3 %v543_v50  ;;  %v382_v53 = vadd.f32 %v381_v51, %v1312_v13 }
  0xd6   :  { %346 = vmatmul.bf16.gmra.mxu0 %v1083_v48  ;;  %v444_v55 = vmul.f32 0.01, %v308_v52 }
  0xd7   :  { %420 = vmatmul.bf16.gmra.mxu1 %v1083_v48  ;;  %v445_v58 = vmul.f32 0.01, %v382_v53 }
  0xd8   :  { %v496_v62 = vmax.f32 %v308_v52, %v444_v55 }
  0xd9   :  { %v497_v0 = vmax.f32 %v382_v53, %v445_v58 }
  0xdb   :  { %v309_v54 = vpop.f32.mrf.mxu0 }
  0xdc   :  { %v310_v56 = vadd.f32 %v309_v54, %v1310_v11  ;;  %v383_v57 = vpop.f32.mrf.mxu1 }
  0xdd   :  { %v384_v59 = vadd.f32 %v383_v57, %v1312_v13 }
  0xde   :  { %v446_v60 = vmul.f32 0.01, %v310_v56 }
  0xdf   :  { %v447_v61 = vmul.f32 0.01, %v384_v59 }
  0xe0   :  { %v498_v63 = vmax.f32 %v310_v56, %v446_v60 }
  0xe1   :  { %v499_v1 = vmax.f32 %v384_v59, %v447_v61 }
  0xe2   :  { %v544_v2 = vpack.c.bf16 %v498_v63, %v496_v62 }
  0xe3   :  { %v312_v4 = vpop.f32.mrf.mxu0  ;;  %v545_v5 = vpack.c.bf16 %v499_v1, %v497_v0 }
  0xe4   :  { %v386_v6 = vpop.f32.mrf.mxu1  ;;  %716 = vmatmul.bf16.gmra.mxu2 %v544_v2  ;;  %v313_v7 = vadd.f32 %v312_v4, %v1310_v11 }
  0xe5   :  { %790 = vmatmul.bf16.gmra.mxu3 %v545_v5  ;;  %v387_v8 = vadd.f32 %v386_v6, %v1312_v13 }
  0xe6   :  { %351 = vmatmul.bf16.gmra.mxu0 %v1084_v3  ;;  %v448_v10 = vmul.f32 0.01, %v313_v7 }
  0xe7   :  { %425 = vmatmul.bf16.gmra.mxu1 %v1084_v3  ;;  %v449_v15 = vmul.f32 0.01, %v387_v8 }
  0xe8   :  { %v500_v19 = vmax.f32 %v313_v7, %v448_v10 }
  0xe9   :  { %v501_v21 = vmax.f32 %v387_v8, %v449_v15 }
  0xeb   :  { %v314_v9 = vpop.f32.mrf.mxu0 }
  0xec   :  { %v315_v12 = vadd.f32 %v314_v9, %v1310_v11  ;;  %v388_v14 = vpop.f32.mrf.mxu1 }
  0xed   :  { %v389_v16 = vadd.f32 %v388_v14, %v1312_v13 }
  0xee   :  { %v450_v17 = vmul.f32 0.01, %v315_v12 }
  0xef   :  { %v451_v18 = vmul.f32 0.01, %v389_v16 }
  0xf0   :  { %v502_v20 = vmax.f32 %v315_v12, %v450_v17 }
  0xf1   :  { %v503_v22 = vmax.f32 %v389_v16, %v451_v18 }
  0xf2   :  { %v546_v23 = vpack.c.bf16 %v502_v20, %v500_v19 }
  0xf3   :  { %v317_v25 = vpop.f32.mrf.mxu0  ;;  %v547_v26 = vpack.c.bf16 %v503_v22, %v501_v21 }
  0xf4   :  { %v391_v27 = vpop.f32.mrf.mxu1  ;;  %721 = vmatmul.bf16.gmra.mxu2 %v546_v23  ;;  %v318_v28 = vadd.f32 %v317_v25, %v1310_v11 }
  0xf5   :  { %795 = vmatmul.bf16.gmra.mxu3 %v547_v26  ;;  %v392_v29 = vadd.f32 %v391_v27, %v1312_v13 }
  0xf6   :  { %356 = vmatmul.bf16.gmra.mxu0 %v1085_v24  ;;  %v452_v31 = vmul.f32 0.01, %v318_v28 }
  0xf7   :  { %430 = vmatmul.bf16.gmra.mxu1 %v1085_v24  ;;  %v453_v34 = vmul.f32 0.01, %v392_v29 }
  0xf8   :  { %v504_v38 = vmax.f32 %v318_v28, %v452_v31 }
  0xf9   :  { %v505_v40 = vmax.f32 %v392_v29, %v453_v34 }
  0xfb   :  { %v319_v30 = vpop.f32.mrf.mxu0 }
  0xfc   :  { %v320_v32 = vadd.f32 %v319_v30, %v1310_v11  ;;  %v393_v33 = vpop.f32.mrf.mxu1 }
  0xfd   :  { %v394_v35 = vadd.f32 %v393_v33, %v1312_v13 }
  0xfe   :  { %v454_v36 = vmul.f32 0.01, %v320_v32 }
  0xff   :  { %v455_v37 = vmul.f32 0.01, %v394_v35 }
 0x100   :  { %v506_v39 = vmax.f32 %v320_v32, %v454_v36 }
 0x101   :  { %v507_v41 = vmax.f32 %v394_v35, %v455_v37 }
 0x102   :  { %v548_v42 = vpack.c.bf16 %v506_v39, %v504_v38 }
 0x103   :  { %v322_v43 = vpop.f32.mrf.mxu0  ;;  %v549_v44 = vpack.c.bf16 %v507_v41, %v505_v40 }
 0x104   :  { %v396_v45 = vpop.f32.mrf.mxu1  ;;  %726 = vmatmul.bf16.gmra.mxu2 %v548_v42  ;;  %v323_v46 = vadd.f32 %v322_v43, %v1310_v11 }
 0x105   :  { %800 = vmatmul.bf16.gmra.mxu3 %v549_v44  ;;  %v397_v47 = vadd.f32 %v396_v45, %v1312_v13 }
 0x106   :  { %v456_v49 = vmul.f32 0.01, %v323_v46 }
 0x107   :  { %v457_v52 = vmul.f32 0.01, %v397_v47 }
 0x108   :  { %v508_v56 = vmax.f32 %v323_v46, %v456_v49 }
 0x109   :  { %v509_v58 = vmax.f32 %v397_v47, %v457_v52 }
 0x10b   :  { %v324_v48 = vpop.f32.mrf.mxu0 }
 0x10c   :  { %v325_v50 = vadd.f32 %v324_v48, %v1310_v11  ;;  %v398_v51 = vpop.f32.mrf.mxu1 }
 0x10d   :  { %v399_v53 = vadd.f32 %v398_v51, %v1312_v13 }
 0x10e   :  { %v458_v54 = vmul.f32 0.01, %v325_v50 }
 0x10f   :  { %v459_v55 = vmul.f32 0.01, %v399_v53 }
 0x110   :  { %v510_v57 = vmax.f32 %v325_v50, %v458_v54 }
 0x111   :  { %v511_v59 = vmax.f32 %v399_v53, %v459_v55 }
 0x112   :  { %v550_v60 = vpack.c.bf16 %v510_v57, %v508_v56  ;;  %v1353_v56 = vld [vmem:[%s1407_s4] ss:$0 sm:$0xff]  ;;  %s1264_s4 = smov [#allocation10]  }
 0x113   :  { %v327_v61 = vpop.f32.mrf.mxu0  ;;  %v551_v62 = vpack.c.bf16 %v511_v59, %v509_v58  ;;  %s876_s15 = sshll.u32 %s1264_s4, 4  ;;  %s877_s15 = int_to_ptr.vmem [resolvable:$true] %s876_s15 }
 0x114   :  { %v401_v63 = vpop.f32.mrf.mxu1  ;;  %731 = vmatmul.bf16.gmra.mxu2 %v550_v60  ;;  %v328_v0 = vadd.f32 %v327_v61, %v1310_v11 }
 0x115   :  { %805 = vmatmul.bf16.gmra.mxu3 %v551_v62  ;;  %v402_v1 = vadd.f32 %v401_v63, %v1312_v13 }
 0x116   :  { %v460_v3 = vmul.f32 0.01, %v328_v0 }
 0x117   :  { %v461_v6 = vmul.f32 0.01, %v402_v1 }
 0x118   :  { %v512_v10 = vmax.f32 %v328_v0, %v460_v3 }
 0x119   :  { %v513_v14 = vmax.f32 %v402_v1, %v461_v6 }
 0x11b   :  { %v329_v2 = vpop.f32.mrf.mxu0 }
 0x11c   :  { %v330_v4 = vadd.f32 %v329_v2, %v1310_v11  ;;  %v403_v5 = vpop.f32.mrf.mxu1 }
 0x11d   :  { %v404_v7 = vadd.f32 %v403_v5, %v1312_v13 }
 0x11e   :  { %v462_v8 = vmul.f32 0.01, %v330_v4 }
 0x11f   :  { %v463_v9 = vmul.f32 0.01, %v404_v7 }
 0x120   :  { %v514_v12 = vmax.f32 %v330_v4, %v462_v8 }
 0x121   :  { %v515_v15 = vmax.f32 %v404_v7, %v463_v9 }
 0x122   :  { %v552_v16 = vpack.c.bf16 %v514_v12, %v512_v10 }
 0x123   :  { %v332_v17 = vpop.f32.mrf.mxu0  ;;  %v553_v18 = vpack.c.bf16 %v515_v15, %v513_v14 }
 0x124   :  { %v406_v19 = vpop.f32.mrf.mxu1  ;;  %736 = vmatmul.bf16.gmra.mxu2 %v552_v16  ;;  %v333_v20 = vadd.f32 %v332_v17, %v1310_v11 }
 0x125   :  { %810 = vmatmul.bf16.gmra.mxu3 %v553_v18  ;;  %v407_v21 = vadd.f32 %v406_v19, %v1312_v13 }
 0x126   :  { %v464_v23 = vmul.f32 0.01, %v333_v20 }
 0x127   :  { %v465_v26 = vmul.f32 0.01, %v407_v21 }
 0x128   :  { %v516_v30 = vmax.f32 %v333_v20, %v464_v23 }
 0x129   :  { %v517_v32 = vmax.f32 %v407_v21, %v465_v26 }
 0x12b   :  { %v334_v22 = vpop.f32.mrf.mxu0 }
 0x12c   :  { %v335_v24 = vadd.f32 %v334_v22, %v1310_v11  ;;  %v408_v25 = vpop.f32.mrf.mxu1 }
 0x12d   :  { %v409_v27 = vadd.f32 %v408_v25, %v1312_v13 }
 0x12e   :  { %v466_v28 = vmul.f32 0.01, %v335_v24 }
 0x12f   :  { %v467_v29 = vmul.f32 0.01, %v409_v27 }
 0x130   :  { %v518_v31 = vmax.f32 %v335_v24, %v466_v28 }
 0x131   :  { %v519_v33 = vmax.f32 %v409_v27, %v467_v29 }
 0x132   :  { %v554_v34 = vpack.c.bf16 %v518_v31, %v516_v30 }
 0x133   :  { %v337_v35 = vpop.f32.mrf.mxu0  ;;  %v555_v36 = vpack.c.bf16 %v519_v33, %v517_v32 }
 0x134   :  { %v411_v37 = vpop.f32.mrf.mxu1  ;;  %741 = vmatmul.bf16.gmra.mxu2 %v554_v34  ;;  %v338_v38 = vadd.f32 %v337_v35, %v1310_v11 }
 0x135   :  { %815 = vmatmul.bf16.gmra.mxu3 %v555_v36  ;;  %v412_v39 = vadd.f32 %v411_v37, %v1312_v13 }
 0x136   :  { %v468_v41 = vmul.f32 0.01, %v338_v38 }
 0x137   :  { %v469_v44 = vmul.f32 0.01, %v412_v39 }
 0x138   :  { %v520_v48 = vmax.f32 %v338_v38, %v468_v41 }
 0x139   :  { %v521_v50 = vmax.f32 %v412_v39, %v469_v44 }
 0x13b   :  { %v339_v40 = vpop.f32.mrf.mxu0 }
 0x13c   :  { %v340_v42 = vadd.f32 %v339_v40, %v1310_v11  ;;  %v413_v43 = vpop.f32.mrf.mxu1 }
 0x13d   :  { %v414_v45 = vadd.f32 %v413_v43, %v1312_v13 }
 0x13e   :  { %v470_v46 = vmul.f32 0.01, %v340_v42 }
 0x13f   :  { %v471_v47 = vmul.f32 0.01, %v414_v45 }
 0x140   :  { %v522_v49 = vmax.f32 %v340_v42, %v470_v46 }
 0x141   :  { %v523_v51 = vmax.f32 %v414_v45, %v471_v47 }
 0x142   :  { %v556_v52 = vpack.c.bf16 %v522_v49, %v520_v48 }
 0x143   :  { %v342_v53 = vpop.f32.mrf.mxu0  ;;  %v557_v54 = vpack.c.bf16 %v523_v51, %v521_v50 }
 0x144   :  { %v416_v55 = vpop.f32.mrf.mxu1  ;;  %746 = vmatmul.bf16.gmra.mxu2 %v556_v52  ;;  %v343_v58 = vadd.f32 %v342_v53, %v1310_v11 }
 0x145   :  { %820 = vmatmul.bf16.gmra.mxu3 %v557_v54  ;;  %v417_v61 = vadd.f32 %v416_v55, %v1312_v13 }
 0x146   :  { %v472_v0 = vmul.f32 0.01, %v343_v58 }
 0x147   :  { %v707_v57 = vpop.f32.mrf.mxu2  ;;  %v473_v3 = vmul.f32 0.01, %v417_v61 }
 0x148   :  { %v708_v59 = vadd.f32 %v1353_v56, %v707_v57  ;;  %v781_v60 = vpop.f32.mrf.mxu3  ;;  %v524_v8 = vmax.f32 %v343_v58, %v472_v0 }
 0x149   :  { %v525_v14 = vmax.f32 %v417_v61, %v473_v3 }
 0x14a   :  { %v782_v62 = vadd.f32 %v781_v60, %v708_v59 }
 0x14b   :  { %v344_v63 = vpop.f32.mrf.mxu0 }
 0x14c   :  { %846 = vst [vmem:[#allocation10] sm:$0xff] %v782_v62  ;;  %v345_v1 = vadd.f32 %v344_v63, %v1310_v11  ;;  %v418_v2 = vpop.f32.mrf.mxu1 }
 0x14d   :  { %v419_v4 = vadd.f32 %v418_v2, %v1312_v13 }
 0x14e   :  { %v474_v5 = vmul.f32 0.01, %v345_v1 }
 0x14f   :  { %v475_v6 = vmul.f32 0.01, %v419_v4  ;;  %v709_v7 = vpop.f32.mrf.mxu2 }
 0x150   :  { %v526_v9 = vmax.f32 %v345_v1, %v474_v5  ;;  %v710_v10 = vadd.f32 %v1353_v56, %v709_v7  ;;  %v783_v12 = vpop.f32.mrf.mxu3 }
 0x151   :  { %v527_v15 = vmax.f32 %v419_v4, %v475_v6 }
 0x152   :  { %v784_v16 = vadd.f32 %v783_v12, %v710_v10  ;;  %v558_v17 = vpack.c.bf16 %v526_v9, %v524_v8 }
 0x153   :  { %v347_v18 = vpop.f32.mrf.mxu0  ;;  %v559_v19 = vpack.c.bf16 %v527_v15, %v525_v14 }
 0x154   :  { %847 = vst [vmem:[#allocation10 + $0x8] sm:$0xff] %v784_v16  ;;  %v421_v20 = vpop.f32.mrf.mxu1  ;;  %751 = vmatmul.bf16.gmra.mxu2 %v558_v17  ;;  %v348_v22 = vadd.f32 %v347_v18, %v1310_v11 }
 0x155   :  { %825 = vmatmul.bf16.gmra.mxu3 %v559_v19  ;;  %v422_v25 = vadd.f32 %v421_v20, %v1312_v13 }
 0x156   :  { %v476_v28 = vmul.f32 0.01, %v348_v22 }
 0x157   :  { %v712_v21 = vpop.f32.mrf.mxu2  ;;  %v477_v31 = vmul.f32 0.01, %v422_v25 }
 0x158   :  { %v713_v23 = vadd.f32 %v1353_v56, %v712_v21  ;;  %v786_v24 = vpop.f32.mrf.mxu3  ;;  %v528_v36 = vmax.f32 %v348_v22, %v476_v28 }
 0x159   :  { %v529_v40 = vmax.f32 %v422_v25, %v477_v31 }
 0x15a   :  { %v787_v26 = vadd.f32 %v786_v24, %v713_v23 }
 0x15b   :  { %v349_v27 = vpop.f32.mrf.mxu0 }
 0x15c   :  { %848 = vst [vmem:[#allocation10 + $0x10] sm:$0xff] %v787_v26  ;;  %v350_v29 = vadd.f32 %v349_v27, %v1310_v11  ;;  %v423_v30 = vpop.f32.mrf.mxu1 }
 0x15d   :  { %v424_v32 = vadd.f32 %v423_v30, %v1312_v13 }
 0x15e   :  { %v478_v33 = vmul.f32 0.01, %v350_v29 }
 0x15f   :  { %v479_v34 = vmul.f32 0.01, %v424_v32  ;;  %v714_v35 = vpop.f32.mrf.mxu2 }
 0x160   :  { %v530_v37 = vmax.f32 %v350_v29, %v478_v33  ;;  %v715_v38 = vadd.f32 %v1353_v56, %v714_v35  ;;  %v788_v39 = vpop.f32.mrf.mxu3 }
 0x161   :  { %v531_v41 = vmax.f32 %v424_v32, %v479_v34 }
 0x162   :  { %v789_v42 = vadd.f32 %v788_v39, %v715_v38  ;;  %v560_v43 = vpack.c.bf16 %v530_v37, %v528_v36 }
 0x163   :  { %v352_v44 = vpop.f32.mrf.mxu0  ;;  %v561_v45 = vpack.c.bf16 %v531_v41, %v529_v40 }
 0x164   :  { %849 = vst [vmem:[#allocation10 + $0x18] sm:$0xff] %v789_v42  ;;  %v426_v46 = vpop.f32.mrf.mxu1  ;;  %756 = vmatmul.bf16.gmra.mxu2 %v560_v43  ;;  %v353_v48 = vadd.f32 %v352_v44, %v1310_v11 }
 0x165   :  { %830 = vmatmul.bf16.gmra.mxu3 %v561_v45  ;;  %v427_v51 = vadd.f32 %v426_v46, %v1312_v13 }
 0x166   :  { %v480_v54 = vmul.f32 0.01, %v353_v48 }
 0x167   :  { %v717_v47 = vpop.f32.mrf.mxu2  ;;  %v481_v58 = vmul.f32 0.01, %v427_v51 }
 0x168   :  { %v718_v49 = vadd.f32 %v1353_v56, %v717_v47  ;;  %v791_v50 = vpop.f32.mrf.mxu3  ;;  %v532_v63 = vmax.f32 %v353_v48, %v480_v54 }
 0x169   :  { %v533_v3 = vmax.f32 %v427_v51, %v481_v58 }
 0x16a   :  { %v792_v52 = vadd.f32 %v791_v50, %v718_v49 }
 0x16b   :  { %v354_v53 = vpop.f32.mrf.mxu0 }
 0x16c   :  { %850 = vst [vmem:[#allocation10 + $0x20] sm:$0xff] %v792_v52  ;;  %v355_v55 = vadd.f32 %v354_v53, %v1310_v11  ;;  %v428_v57 = vpop.f32.mrf.mxu1 }
 0x16d   :  { %v429_v59 = vadd.f32 %v428_v57, %v1312_v13 }
 0x16e   :  { %v482_v60 = vmul.f32 0.01, %v355_v55 }
 0x16f   :  { %v483_v61 = vmul.f32 0.01, %v429_v59  ;;  %v719_v62 = vpop.f32.mrf.mxu2 }
 0x170   :  { %v534_v0 = vmax.f32 %v355_v55, %v482_v60  ;;  %v720_v1 = vadd.f32 %v1353_v56, %v719_v62  ;;  %v793_v2 = vpop.f32.mrf.mxu3 }
 0x171   :  { %v535_v4 = vmax.f32 %v429_v59, %v483_v61 }
 0x172   :  { %v794_v5 = vadd.f32 %v793_v2, %v720_v1  ;;  %v562_v6 = vpack.c.bf16 %v534_v0, %v532_v63 }
 0x173   :  { %v357_v7 = vpop.f32.mrf.mxu0  ;;  %v563_v8 = vpack.c.bf16 %v535_v4, %v533_v3 }
 0x174   :  { %851 = vst [vmem:[#allocation10 + $0x28] sm:$0xff] %v794_v5  ;;  %v431_v9 = vpop.f32.mrf.mxu1  ;;  %761 = vmatmul.bf16.gmra.mxu2 %v562_v6  ;;  %v358_v12 = vadd.f32 %v357_v7, %v1310_v11 }
 0x175   :  { %835 = vmatmul.bf16.gmra.mxu3 %v563_v8  ;;  %v432_v16 = vadd.f32 %v431_v9, %v1312_v13 }
 0x176   :  { %v484_v19 = vmul.f32 0.01, %v358_v12 }
 0x177   :  { %v722_v10 = vpop.f32.mrf.mxu2  ;;  %v485_v22 = vmul.f32 0.01, %v432_v16 }
 0x178   :  { %v723_v14 = vadd.f32 %v1353_v56, %v722_v10  ;;  %v796_v15 = vpop.f32.mrf.mxu3  ;;  %v536_v27 = vmax.f32 %v358_v12, %v484_v19 }
 0x179   :  { %v537_v31 = vmax.f32 %v432_v16, %v485_v22 }
 0x17a   :  { %v797_v17 = vadd.f32 %v796_v15, %v723_v14 }
 0x17b   :  { %v359_v18 = vpop.f32.mrf.mxu0 }
 0x17c   :  { %852 = vst [vmem:[#allocation10 + $0x30] sm:$0xff] %v797_v17  ;;  %v360_v20 = vadd.f32 %v359_v18, %v1310_v11  ;;  %v433_v21 = vpop.f32.mrf.mxu1 }
 0x17d   :  { %v434_v23 = vadd.f32 %v433_v21, %v1312_v13 }
 0x17e   :  { %v486_v24 = vmul.f32 0.01, %v360_v20 }
 0x17f   :  { %v487_v25 = vmul.f32 0.01, %v434_v23  ;;  %v724_v26 = vpop.f32.mrf.mxu2 }
 0x180   :  { %v538_v28 = vmax.f32 %v360_v20, %v486_v24  ;;  %v725_v29 = vadd.f32 %v1353_v56, %v724_v26  ;;  %v798_v30 = vpop.f32.mrf.mxu3 }
 0x181   :  { %v539_v32 = vmax.f32 %v434_v23, %v487_v25 }
 0x182   :  { %v799_v33 = vadd.f32 %v798_v30, %v725_v29  ;;  %v564_v34 = vpack.c.bf16 %v538_v28, %v536_v27 }
 0x183   :  { %v565_v35 = vpack.c.bf16 %v539_v32, %v537_v31 }
 0x184   :  { %853 = vst [vmem:[#allocation10 + $0x38] sm:$0xff] %v799_v33  ;;  %766 = vmatmul.bf16.gmra.mxu2 %v564_v34 }
 0x185   :  { %840 = vmatmul.bf16.gmra.mxu3 %v565_v35 }
 0x187   :  { %v727_v11 = vpop.f32.mrf.mxu2 }
 0x188   :  { %v728_v36 = vadd.f32 %v1353_v56, %v727_v11  ;;  %v801_v13 = vpop.f32.mrf.mxu3 }
 0x18a   :  { %v802_v37 = vadd.f32 %v801_v13, %v728_v36 }
 0x18c   :  { %854 = vst [vmem:[#allocation10 + $0x40] sm:$0xff] %v802_v37 }
 0x18f   :  { %v729_v38 = vpop.f32.mrf.mxu2 }
 0x190   :  { %v730_v39 = vadd.f32 %v1353_v56, %v729_v38  ;;  %v803_v40 = vpop.f32.mrf.mxu3 }
 0x192   :  { %v804_v41 = vadd.f32 %v803_v40, %v730_v39 }
 0x194   :  { %855 = vst [vmem:[#allocation10 + $0x48] sm:$0xff] %v804_v41 }
 0x197   :  { %v732_v42 = vpop.f32.mrf.mxu2 }
 0x198   :  { %v733_v43 = vadd.f32 %v1353_v56, %v732_v42  ;;  %v806_v44 = vpop.f32.mrf.mxu3 }
 0x19a   :  { %v807_v45 = vadd.f32 %v806_v44, %v733_v43 }
 0x19c   :  { %856 = vst [vmem:[#allocation10 + $0x50] sm:$0xff] %v807_v45 }
 0x19f   :  { %v734_v46 = vpop.f32.mrf.mxu2 }
 0x1a0   :  { %v735_v47 = vadd.f32 %v1353_v56, %v734_v46  ;;  %v808_v48 = vpop.f32.mrf.mxu3 }
 0x1a2   :  { %v809_v49 = vadd.f32 %v808_v48, %v735_v47 }
 0x1a4   :  { %857 = vst [vmem:[#allocation10 + $0x58] sm:$0xff] %v809_v49 }
 0x1a7   :  { %v737_v50 = vpop.f32.mrf.mxu2 }
 0x1a8   :  { %v738_v51 = vadd.f32 %v1353_v56, %v737_v50  ;;  %v811_v52 = vpop.f32.mrf.mxu3 }
 0x1aa   :  { %v812_v53 = vadd.f32 %v811_v52, %v738_v51 }
 0x1ac   :  { %858 = vst [vmem:[#allocation10 + $0x60] sm:$0xff] %v812_v53 }
 0x1af   :  { %v739_v54 = vpop.f32.mrf.mxu2 }
 0x1b0   :  { %v740_v55 = vadd.f32 %v1353_v56, %v739_v54  ;;  %v813_v57 = vpop.f32.mrf.mxu3 }
 0x1b2   :  { %v814_v58 = vadd.f32 %v813_v57, %v740_v55 }
 0x1b4   :  { %859 = vst [vmem:[#allocation10 + $0x68] sm:$0xff] %v814_v58 }
 0x1b7   :  { %v742_v59 = vpop.f32.mrf.mxu2 }
 0x1b8   :  { %v743_v60 = vadd.f32 %v1353_v56, %v742_v59  ;;  %v816_v61 = vpop.f32.mrf.mxu3 }
 0x1ba   :  { %v817_v62 = vadd.f32 %v816_v61, %v743_v60 }
 0x1bc   :  { %860 = vst [vmem:[#allocation10 + $0x70] sm:$0xff] %v817_v62 }
 0x1bf   :  { %v744_v63 = vpop.f32.mrf.mxu2 }
 0x1c0   :  { %v745_v0 = vadd.f32 %v1353_v56, %v744_v63  ;;  %v818_v1 = vpop.f32.mrf.mxu3 }
 0x1c2   :  { %v819_v2 = vadd.f32 %v818_v1, %v745_v0 }
 0x1c4   :  { %861 = vst [vmem:[#allocation10 + $0x78] sm:$0xff] %v819_v2 }
 0x1c7   :  { %v747_v3 = vpop.f32.mrf.mxu2 }
 0x1c8   :  { %v748_v4 = vadd.f32 %v1353_v56, %v747_v3  ;;  %v821_v5 = vpop.f32.mrf.mxu3 }
 0x1ca   :  { %v822_v6 = vadd.f32 %v821_v5, %v748_v4 }
 0x1cc   :  { %862 = vst [vmem:[#allocation10 + $0x80] sm:$0xff] %v822_v6 }
 0x1cf   :  { %v749_v7 = vpop.f32.mrf.mxu2 }
 0x1d0   :  { %v750_v8 = vadd.f32 %v1353_v56, %v749_v7  ;;  %v823_v9 = vpop.f32.mrf.mxu3 }
 0x1d2   :  { %v824_v10 = vadd.f32 %v823_v9, %v750_v8 }
 0x1d4   :  { %863 = vst [vmem:[#allocation10 + $0x88] sm:$0xff] %v824_v10 }
 0x1d7   :  { %v752_v12 = vpop.f32.mrf.mxu2 }
 0x1d8   :  { %v753_v14 = vadd.f32 %v1353_v56, %v752_v12  ;;  %v826_v15 = vpop.f32.mrf.mxu3 }
 0x1da   :  { %v827_v16 = vadd.f32 %v826_v15, %v753_v14 }
 0x1dc   :  { %864 = vst [vmem:[#allocation10 + $0x90] sm:$0xff] %v827_v16 }
 0x1df   :  { %v754_v17 = vpop.f32.mrf.mxu2 }
 0x1e0   :  { %v755_v18 = vadd.f32 %v1353_v56, %v754_v17  ;;  %v828_v19 = vpop.f32.mrf.mxu3 }
 0x1e2   :  { %v829_v20 = vadd.f32 %v828_v19, %v755_v18 }
 0x1e4   :  { %865 = vst [vmem:[#allocation10 + $0x98] sm:$0xff] %v829_v20 }
 0x1e7   :  { %v757_v21 = vpop.f32.mrf.mxu2 }
 0x1e8   :  { %v758_v22 = vadd.f32 %v1353_v56, %v757_v21  ;;  %v831_v23 = vpop.f32.mrf.mxu3 }
 0x1ea   :  { %v832_v24 = vadd.f32 %v831_v23, %v758_v22 }
 0x1ec   :  { %866 = vst [vmem:[#allocation10 + $0xa0] sm:$0xff] %v832_v24 }
 0x1ef   :  { %v759_v25 = vpop.f32.mrf.mxu2 }
 0x1f0   :  { %v760_v26 = vadd.f32 %v1353_v56, %v759_v25  ;;  %v833_v27 = vpop.f32.mrf.mxu3 }
 0x1f2   :  { %v834_v28 = vadd.f32 %v833_v27, %v760_v26 }
 0x1f4   :  { %867 = vst [vmem:[#allocation10 + $0xa8] sm:$0xff] %v834_v28 }
 0x1f7   :  { %v762_v29 = vpop.f32.mrf.mxu2 }
 0x1f8   :  { %v763_v30 = vadd.f32 %v1353_v56, %v762_v29  ;;  %v836_v31 = vpop.f32.mrf.mxu3 }
 0x1fa   :  { %v837_v32 = vadd.f32 %v836_v31, %v763_v30 }
 0x1fc   :  { %868 = vst [vmem:[#allocation10 + $0xb0] sm:$0xff] %v837_v32 }
 0x1ff   :  { %v764_v33 = vpop.f32.mrf.mxu2 }
 0x200   :  { %v765_v34 = vadd.f32 %v1353_v56, %v764_v33  ;;  %v838_v35 = vpop.f32.mrf.mxu3 }
 0x202   :  { %v839_v11 = vadd.f32 %v838_v35, %v765_v34 }
 0x204   :  { %869 = vst [vmem:[#allocation10 + $0xb8] sm:$0xff] %v839_v11 }
 0x207   :  { %v767_v36 = vpop.f32.mrf.mxu2 }
 0x208   :  { %v768_v13 = vadd.f32 %v1353_v56, %v767_v36  ;;  %v841_v37 = vpop.f32.mrf.mxu3 }
 0x20a   :  { %v842_v38 = vadd.f32 %v841_v37, %v768_v13 }
 0x20c   :  { %870 = vst [vmem:[#allocation10 + $0xc0] sm:$0xff] %v842_v38 }
 0x20f   :  { %v769_v39 = vpop.f32.mrf.mxu2 }
 0x210   :  { %v770_v40 = vadd.f32 %v1353_v56, %v769_v39  ;;  %v843_v41 = vpop.f32.mrf.mxu3 }
 0x212   :  { %v844_v42 = vadd.f32 %v843_v41, %v770_v40 }
 0x214   :  { %871 = vst [vmem:[#allocation10 + $0xc8] sm:$0xff] %v844_v42 }
 0x215   :  { %884 = dma.vmem_to_hbm [thread:$0]  %s877_s15, 3328, %s879_s18, [#allocation4], %s1257_s26, %s1257_s26, %s1258_s27  }
 0x216   :  { %1254 = dma.done.wait [#allocation4], 3328  }
 0x217   :  { %1255 = vsyncadd [#allocation4], 4294963968 }
 0x218   :  { %889 = vsyncpa [#allocation3], 1 }
 0x219   :  { %890 = vsyncpa [#allocation6], 1 }
 0x21a   :  { %891 = vsyncpa [#allocation9], 1 }
 0x21b   :  { %892 = vsyncpa [#allocation4], 1 }

</bundles_post_ra>
